<compile_context>
chip_gen: v6e
topology: v6e:2x2x1
jax: 0.10.0
libtpu: 0.0.40
codegen_flags: <defaults>
</compile_context>

<pallas_src>
import jax
import jax.numpy as jnp
from jax.experimental import pallas as pl
from jax.experimental.pallas import tpu as pltpu


def graph_conv_kernel(adj_ref, x_ref, w_ref, b_ref, o_ref):
    # Whole-problem blocks; one kernel invocation, batch loop unrolled.
    w = w_ref[...]            # (Cin, H) f32
    bias = b_ref[...]         # (1, H)   f32
    B = adj_ref.shape[0]      # static (= 2)
    for i in range(B):        # static Python unroll — no grid-step overhead
        # PyTorch ordering: support = x @ W, then adj @ support (f32 MXU acc).
        support = jnp.dot(x_ref[i], w,
                          preferred_element_type=jnp.float32)       # (S, H)
        o_ref[i] = jnp.dot(adj_ref[i], support,
                           preferred_element_type=jnp.float32) + bias


def graph_convolution(x, adj, weight, bias):
    """x: (B, S, Cin) f32, adj: (B, S, S) f32, weight: (Cin, H) f32, bias: (H,) f32."""
    B, S, _ = x.shape
    H = weight.shape[1]
    bias2 = bias.reshape(1, H)  # >=2-D for clean TPU layout

    vmem = pl.BlockSpec(memory_space=pltpu.MemorySpace.VMEM)
    return pl.pallas_call(
        graph_conv_kernel,
        out_shape=jax.ShapeDtypeStruct((B, S, H), jnp.float32),
        in_specs=[vmem, vmem, vmem, vmem],   # whole arrays resident in VMEM
        out_specs=vmem,
    )(adj, x, weight, bias2)


if __name__ == "__main__":
    # Small shapes consistent with the module: batch=2, nodes(seq)=8,
    # in_features=4, out_features(hidden)=32.
    B, S, C_IN, H = 2, 8, 4, 32

    key = jax.random.PRNGKey(0)
    kx, ka, kw = jax.random.split(key, 3)

    x = jax.random.normal(kx, (B, S, C_IN), dtype=jnp.float32)
    a = jax.random.uniform(ka, (B, S, S), dtype=jnp.float32)
    adj = 0.5 * (a + jnp.swapaxes(a, 1, 2)) + jnp.eye(S, dtype=jnp.float32)[None]

    # Parameters matching __init__: weight ~ randn(in, out), bias = zeros(out).
    weight = jax.random.normal(kw, (C_IN, H), dtype=jnp.float32)
    bias = jnp.zeros((H,), dtype=jnp.float32)

    out = jax.jit(graph_convolution)(x, adj, weight, bias)
    jax.block_until_ready(out)

    # Pure f32 reference in the original PyTorch order (support first).
    support = jnp.einsum("bsc,ch->bsh", x, weight,
                         preferred_element_type=jnp.float32)
    ref = jnp.einsum("bst,bth->bsh", adj, support,
                     preferred_element_type=jnp.float32) + bias[None, None, :]
    assert jnp.allclose(out, ref, atol=1e-4, rtol=1e-4), "mismatch vs reference"

    print("KERNEL_OK")
</pallas_src>

<mosaic_0001>
module attributes {stable_mosaic.version = 11 : i64} {
  func.func @graph_conv_kernel(%arg0: memref<2x8x8xf32, #tpu.memory_space<vmem>>, %arg1: memref<2x8x4xf32, #tpu.memory_space<vmem>>, %arg2: memref<4x32xf32, #tpu.memory_space<vmem>>, %arg3: memref<1x32xf32, #tpu.memory_space<vmem>>, %arg4: memref<2x8x32xf32, #tpu.memory_space<vmem>>) attributes {dimension_semantics = [], scalar_prefetch = 0 : i64, scratch_operands = 0 : i64, tpu.core_type = #tpu.core_type<tc>} {
    %c0 = arith.constant 0 : index
    %c0_0 = arith.constant 0 : index
    %0 = vector.load %arg2[%c0, %c0_0] : memref<4x32xf32, #tpu.memory_space<vmem>>, vector<4x32xf32>
    %c0_1 = arith.constant 0 : index
    %c0_2 = arith.constant 0 : index
    %1 = vector.load %arg3[%c0_1, %c0_2] : memref<1x32xf32, #tpu.memory_space<vmem>>, vector<1x32xf32>
    %c0_3 = arith.constant 0 : index
    %c0_4 = arith.constant 0 : index
    %c0_5 = arith.constant 0 : index
    %2 = vector.load %arg1[%c0_3, %c0_4, %c0_5] : memref<2x8x4xf32, #tpu.memory_space<vmem>>, vector<1x8x4xf32>
    %3 = vector.shape_cast %2 : vector<1x8x4xf32> to vector<8x4xf32>
    %cst = arith.constant dense<0.000000e+00> : vector<8x32xf32>
    %4 = tpu.matmul %3, %0, %cst {dimension_numbers = #tpu.dot_dimension_numbers<[1], [0], [0], [1], [0, 0, 1, 1], [], []>} : vector<8x4xf32>, vector<4x32xf32>, vector<8x32xf32> -> vector<8x32xf32>
    %c0_6 = arith.constant 0 : index
    %c0_7 = arith.constant 0 : index
    %c0_8 = arith.constant 0 : index
    %5 = vector.load %arg0[%c0_6, %c0_7, %c0_8] : memref<2x8x8xf32, #tpu.memory_space<vmem>>, vector<1x8x8xf32>
    %6 = vector.shape_cast %5 : vector<1x8x8xf32> to vector<8x8xf32>
    %cst_9 = arith.constant dense<0.000000e+00> : vector<8x32xf32>
    %7 = tpu.matmul %6, %4, %cst_9 {dimension_numbers = #tpu.dot_dimension_numbers<[1], [0], [0], [1], [0, 0, 1, 1], [], []>} : vector<8x8xf32>, vector<8x32xf32>, vector<8x32xf32> -> vector<8x32xf32>
    %8 = vector.broadcast %1 : vector<1x32xf32> to vector<8x32xf32>
    %9 = arith.addf %7, %8 : vector<8x32xf32>
    %c0_10 = arith.constant 0 : index
    %c0_11 = arith.constant 0 : index
    %c0_12 = arith.constant 0 : index
    %10 = vector.load %arg4[%c0_10, %c0_11, %c0_12] : memref<2x8x32xf32, #tpu.memory_space<vmem>>, vector<1x8x32xf32>
    %11 = vector.shape_cast %10 : vector<1x8x32xf32> to vector<8x32xf32>
    %12 = vector.shape_cast %9 : vector<8x32xf32> to vector<1x8x32xf32>
    tpu.vector_store %arg4[%c0_10, %c0_11, %c0_12], %12 {strides = array<i32>} : memref<2x8x32xf32, #tpu.memory_space<vmem>>, vector<1x8x32xf32>,
    %c1 = arith.constant 1 : index
    %c0_13 = arith.constant 0 : index
    %c0_14 = arith.constant 0 : index
    %13 = vector.load %arg1[%c1, %c0_13, %c0_14] : memref<2x8x4xf32, #tpu.memory_space<vmem>>, vector<1x8x4xf32>
    %14 = vector.shape_cast %13 : vector<1x8x4xf32> to vector<8x4xf32>
    %cst_15 = arith.constant dense<0.000000e+00> : vector<8x32xf32>
    %15 = tpu.matmul %14, %0, %cst_15 {dimension_numbers = #tpu.dot_dimension_numbers<[1], [0], [0], [1], [0, 0, 1, 1], [], []>} : vector<8x4xf32>, vector<4x32xf32>, vector<8x32xf32> -> vector<8x32xf32>
    %c1_16 = arith.constant 1 : index
    %c0_17 = arith.constant 0 : index
    %c0_18 = arith.constant 0 : index
    %16 = vector.load %arg0[%c1_16, %c0_17, %c0_18] : memref<2x8x8xf32, #tpu.memory_space<vmem>>, vector<1x8x8xf32>
    %17 = vector.shape_cast %16 : vector<1x8x8xf32> to vector<8x8xf32>
    %cst_19 = arith.constant dense<0.000000e+00> : vector<8x32xf32>
    %18 = tpu.matmul %17, %15, %cst_19 {dimension_numbers = #tpu.dot_dimension_numbers<[1], [0], [0], [1], [0, 0, 1, 1], [], []>} : vector<8x8xf32>, vector<8x32xf32>, vector<8x32xf32> -> vector<8x32xf32>
    %19 = vector.broadcast %1 : vector<1x32xf32> to vector<8x32xf32>
    %20 = arith.addf %18, %19 : vector<8x32xf32>
    %c1_20 = arith.constant 1 : index
    %c0_21 = arith.constant 0 : index
    %c0_22 = arith.constant 0 : index
    %21 = vector.load %arg4[%c1_20, %c0_21, %c0_22] : memref<2x8x32xf32, #tpu.memory_space<vmem>>, vector<1x8x32xf32>
    %22 = vector.shape_cast %21 : vector<1x8x32xf32> to vector<8x32xf32>
    %23 = vector.shape_cast %20 : vector<8x32xf32> to vector<1x8x32xf32>
    tpu.vector_store %arg4[%c1_20, %c0_21, %c0_22], %23 {strides = array<i32>} : memref<2x8x32xf32, #tpu.memory_space<vmem>>, vector<1x8x32xf32>,
    return
  }
}

</mosaic_0001>

<bundles_post_ra>
// kernel: graph_convolution.1
= control target key start
LH: loop header
LB: loop body
LE: loop exit
PB: predicated region body
PF: predicated region fallthrough
CT: control target
= control target key end

     0   :  { %vm25_vm0 = vcmask 1043456   ;;  %v414_v2 = vmov 0.0   ;;  %vm415_vm1 = vmmov 0   ;;  %vm21_vm2 = vcmask 31744   ;;  %s469_s0 = inlined_call_operand.vmem [shape: f32[2,8,8], index: 0, kind: input, shape index: {}]   ;;  %s470_s1 = inlined_call_operand.vmem [shape: f32[2,8,4], index: 1, kind: input, shape index: {}]   ;;  %s471_s2 = inlined_call_operand.vmem [shape: f32[4,32], index: 2, kind: input, shape index: {}]   ;;  %s472_s3 = inlined_call_operand.vmem [shape: f32[1,32], index: 3, kind: input, shape index: {}]   ;;  %s473_s4 = inlined_call_operand.hbm [shape: f32[2,8,32], index: 4, kind: output, shape index: {}]  }
   0x1   :  { %v18_v0 = vld [vmem:[%s471_s2] sm:$0xf]  ;;  %367 = vmatprep.subr.mxu0 %v414_v2  ;;  %369 = vmatprep.mubr.msk.f32.mxu0 %vm415_vm1, %v414_v2 }
   0x2   :  { %v20_v1 = vld [vmem:[%s470_s1] sm:$0xff] }
   0x3   :  { %9 = vsyncpa [#allocation3], 0  ;;  %368 = vmatpush3.msk.msra.mxu0 %vm25_vm0, %v18_v0  ;;  %372 = vmatprep.subr.mxu1 %v414_v2  ;;  %v354_v3 = vld [vmem:[%s470_s1 + $0x8] sm:$0xff]  ;;  %v99_v4 = vld [vmem:[%s469_s0] sm:$0xff]  ;;  %vm106_vm3 = vcmask 64512   ;;  %vm180_vm4 = vcmask 261120  }
   0x4   :  { %370 = vmatmul.mubr.msk.f32.vlgmr.msra.gmra.mxu0 %vm21_vm2, %v20_v1  ;;  %377 = vmatprep.subr.mxu0 %v414_v2  ;;  %v357_v7 = vld [vmem:[%s469_s0 + $0x8] sm:$0xff]  ;;  %v352_v10 = vld [vmem:[%s472_s3] ss:$0 sm:$0xff]  ;;  %s416_s25 = smov [#allocation2]  }
   0x5   :  { %378 = vmatpush3.msk.msra.mxu0 %vm25_vm0, %v18_v0  ;;  %379 = vmatprep.mubr.msk.f32.mxu0 %vm415_vm1, %v414_v2  ;;  %s339_s26 = sshll.u32 %s416_s25, 4  ;;  %s340_s26 = int_to_ptr.vmem [resolvable:$true] %s339_s26 }
   0x6   :  { %374 = vmatprep.mubr.msk.f32.mxu1 %vm415_vm1, %v414_v2  ;;  %s392_s0 = scalar_lea.vmem %s340_s26, 256  ;;  %p397_p1 = scmp.lt.s32.totalorder %s340_s26, %s340_s26 }
   0x7   :  { %p393_p0 = scmp.ne.s32.totalorder %s340_s26, %s392_s0  ;;  %p398_p2 = scmp.lt.s32.totalorder %s392_s0, %s392_s0 }
   0x8   :  { %380 = vmatmul.mubr.msk.f32.vlgmr.msra.gmra.mxu0 %vm21_vm2, %v354_v3 }
   0x9   :  { %p399_p3 = por %p398_p2, %p397_p1 }
   0xb   :  { %p400_p4 = pnand %p399_p3, %p393_p0 }
  0xc4   :  { %v95_v5 = vpop.f32.mrf.mxu0 }
  0xc5   :  { %373 = vmatpush3.msra.mxu1 %v95_v5 }
  0xc6   :  { %v371_v6 = vpop.f32.mrf.mxu0  ;;  %375 = vmatmul.mubr.msk.f32.vlgmr.msra.gmra.mxu1 %vm106_vm3, %v99_v4  ;;  %382 = vmatprep.subr.mxu1 %v414_v2 }
  0xc7   :  { %384 = vmatprep.mubr.msk.f32.mxu1 %vm415_vm1, %v414_v2 }
  0xc8   :  { %v253_v8 = vpop.f32.mrf.mxu0 }
  0xc9   :  { %383 = vmatpush3.msra.mxu1 %v253_v8 }
  0xca   :  { %v381_v9 = vpop.f32.mrf.mxu0  ;;  %385 = vmatmul.mubr.msk.f32.vlgmr.msra.gmra.mxu1 %vm106_vm3, %v357_v7 }
 0x186   :  { %v176_v11 = vpop.f32.mrf.mxu1 }
 0x187   :  { %v177_v12 = vadd.f32 %v352_v10, %v176_v11 }
 0x188   :  { %v376_v13 = vpop.f32.mrf.mxu1 }
 0x189   :  { %181 = vst.msk [vmem:[#allocation2] sm:$0xff] %vm180_vm4, %v177_v12 }
 0x18a   :  { %v328_v14 = vpop.f32.mrf.mxu1 }
 0x18b   :  { %v329_v15 = vadd.f32 %v352_v10, %v328_v14 }
 0x18c   :  { %v386_v16 = vpop.f32.mrf.mxu1 }
 0x18d   :  { %333 = vst.msk [vmem:[#allocation2 + $0x8] sm:$0xff] %vm180_vm4, %v329_v15 }
 0x18e   :  { %403 = shalt.err (!%p400_p4)
}
 0x18f   :  { %s417_s3 = smov 128   ;;  %s418_s27 = smov 8  }
 0x190   :  { %345 = dma.vmem_to_hbm [thread:$0]  %s340_s26, 256, %s473_s4, [#allocation3], %s417_s3, %s417_s3, %s418_s27  }
 0x191   :  { %412 = dma.done.wait [#allocation3], 256  }
 0x192   :  { %413 = vsyncadd [#allocation3], 4294967040 }
 0x193   :  { %349 = vsyncpa [#allocation3], 1 }

</bundles_post_ra>
